<compile_context>
chip_gen: v7x
topology: tpu7x:2x2x1
jax: 0.10.0
libtpu: 0.0.40
codegen_flags: <defaults>
</compile_context>

<pallas_src>
import math

import jax
import jax.numpy as jnp
from jax.experimental import pallas as pl
from jax.experimental.pallas import tpu as pltpu


def make_cdf_kernel(layer_dims):
    """layer_dims: list of (f_out, f_in) per layer, i.e. (ft[i+1], ft[i])."""
    num_layers = len(layer_dims)

    def kernel(x_ref, *refs):
        w_refs = refs[:num_layers]                       # (f_out, f_in, Cb, 1)
        b_refs = refs[num_layers:2 * num_layers]         # (f_out, Cb, 1)
        f_refs = refs[2 * num_layers:3 * num_layers - 1] # (f_out, Cb, 1) tanh'd
        out_ref = refs[3 * num_layers - 1]               # (Cb, Nb)

        # logits kept as a list of per-filter-row (Cb, Nb) tiles:
        # channels on sublanes (full occupancy), points on lanes.
        rows = [x_ref[...]]                              # ft[0] == 1

        for i, (f_out, f_in) in enumerate(layer_dims):
            w_ref = w_refs[i]
            b_ref = b_refs[i]
            new_rows = []
            for k in range(f_out):
                # start from the j=0 term (no zero-fill), unroll j (f_in <= 3)
                acc = w_ref[k, 0] * rows[0]              # (Cb,1) * (Cb,Nb)
                for j in range(1, f_in):
                    acc = acc + w_ref[k, j] * rows[j]
                new_rows.append(acc + b_ref[k])          # bias broadcast over N
            if i < num_layers - 1:
                fac_ref = f_refs[i]                      # already tanh(factor)
                for k in range(f_out):
                    new_rows[k] = new_rows[k] + fac_ref[k] * jnp.tanh(new_rows[k])
            rows = new_rows

        out_ref[...] = rows[0]                           # last layer: f_out == 1

    return kernel


def _round_up(x, m):
    return (x + m - 1) // m * m


def _pick_tile(total, candidates):
    for c in candidates:
        if total % c == 0:
            return c
    return total


def cdf_forward(x, matrices, biases, factors, stop_gradient=False):
    """Pallas CDF forward.  x: (C, 1, N) float32 -> (C, 1, N) float32."""
    if stop_gradient:
        # forward numerics identical; detach only matters for gradients
        matrices = [jax.lax.stop_gradient(m) for m in matrices]
        biases = [jax.lax.stop_gradient(b) for b in biases]
        factors = [jax.lax.stop_gradient(f) for f in factors]

    C, one, N = x.shape
    assert one == 1
    num_layers = len(matrices)
    layer_dims = [(int(m.shape[1]), int(m.shape[2])) for m in matrices]

    # ---- precompute parameter nonlinearities once, channels -> sublane axis ----
    sp_w = [jnp.transpose(jax.nn.softplus(m), (1, 2, 0))[..., None]  # (fo, fi, C, 1)
            for m in matrices]
    b_t = [jnp.transpose(b, (1, 0, 2)) for b in biases]              # (fo, C, 1)
    th_f = [jnp.transpose(jnp.tanh(f), (1, 0, 2)) for f in factors]  # (fo, C, 1)

    # ---- pad channels to a multiple of 8 (sublanes), N to a multiple of 128 ----
    C_pad = _round_up(C, 8)
    N_pad = _round_up(N, 128)
    Cb = _pick_tile(C_pad, (32, 16, 8))
    Nb = _pick_tile(N_pad, (2048, 1024, 512, 256, 128))

    x2 = x[:, 0, :]                                                  # (C, N)
    if C_pad != C or N_pad != N:
        x2 = jnp.pad(x2, ((0, C_pad - C), (0, N_pad - N)))
    if C_pad != C:
        dc = C_pad - C
        sp_w = [jnp.pad(w, ((0, 0), (0, 0), (0, dc), (0, 0))) for w in sp_w]
        b_t = [jnp.pad(b, ((0, 0), (0, dc), (0, 0))) for b in b_t]
        th_f = [jnp.pad(f, ((0, 0), (0, dc), (0, 0))) for f in th_f]

    grid = (C_pad // Cb, N_pad // Nb)   # inner axis = N tiles -> params re-DMA
                                        # only when the channel block changes

    in_specs = [pl.BlockSpec((Cb, Nb), lambda ci, ni: (ci, ni))]
    for (f_out, f_in) in layer_dims:
        in_specs.append(
            pl.BlockSpec((f_out, f_in, Cb, 1), lambda ci, ni: (0, 0, ci, 0)))
    for (f_out, _) in layer_dims:
        in_specs.append(
            pl.BlockSpec((f_out, Cb, 1), lambda ci, ni: (0, ci, 0)))
    for (f_out, _) in layer_dims[:-1]:
        in_specs.append(
            pl.BlockSpec((f_out, Cb, 1), lambda ci, ni: (0, ci, 0)))

    out_spec = pl.BlockSpec((Cb, Nb), lambda ci, ni: (ci, ni))

    out = pl.pallas_call(
        make_cdf_kernel(layer_dims),
        out_shape=jax.ShapeDtypeStruct((C_pad, N_pad), x.dtype),
        grid=grid,
        in_specs=in_specs,
        out_specs=out_spec,
        compiler_params=pltpu.CompilerParams(
            dimension_semantics=("parallel", "parallel")),
    )(x2, *sp_w, *b_t, *th_f)

    return out[:C, :N][:, None, :]


def init_cdf_params(key, channels, filters):
    """Deterministic synthetic init matching the PyTorch __init__ shapes."""
    ft = (1,) + tuple(int(nf) for nf in filters) + (1,)
    init_scale = 10.0
    scale = init_scale ** (1.0 / (len(ft) - 1))
    matrices, biases, factors = [], [], []
    for i in range(len(ft) - 1):
        init = math.log(math.expm1(1.0 / scale / ft[i + 1]))
        key, k_m, k_b = jax.random.split(key, 3)
        m = init + jax.random.uniform(
            k_m, (channels, ft[i + 1], ft[i]),
            minval=-abs(init) / 5.0, maxval=abs(init) / 5.0)
        matrices.append(m.astype(jnp.float32))
        b = jax.random.uniform(
            k_b, (channels, ft[i + 1], 1), minval=-0.5, maxval=0.5)
        biases.append(b.astype(jnp.float32))
        if i < len(ft) - 2:
            factors.append(jnp.zeros((channels, ft[i + 1], 1), jnp.float32))
    return matrices, biases, factors


def cdf_reference(x, matrices, biases, factors):
    """Pure-JAX reference mirroring the PyTorch forward."""
    logits = x
    n = len(matrices)
    for i in range(n):
        m = jax.nn.softplus(matrices[i])
        logits = jnp.matmul(m, logits)
        logits = logits + biases[i]
        if i < n - 1:
            logits = logits + jnp.tanh(factors[i]) * jnp.tanh(logits)
    return logits


if __name__ == "__main__":
    channels = 4
    filters = (3, 3, 3)
    N = 384  # number of evaluation points per channel (multiple of 128)

    key = jax.random.PRNGKey(0)
    key, k_x = jax.random.split(key)
    x = jax.random.normal(k_x, (channels, 1, N), dtype=jnp.float32)

    matrices, biases, factors = init_cdf_params(key, channels, filters)

    out = cdf_forward(x, matrices, biases, factors, stop_gradient=True)
    out = jax.block_until_ready(out)

    ref = cdf_reference(x, matrices, biases, factors)
    assert out.shape == (channels, 1, N)
    assert jnp.allclose(out, ref, atol=1e-5, rtol=1e-5), "mismatch vs reference"

    print("KERNEL_OK")
</pallas_src>

<mosaic_0001>
module attributes {stable_mosaic.version = 11 : i64} {
  func.func @kernel(%arg0: i32, %arg1: i32, %arg2: memref<8x128xf32, #tpu.memory_space<vmem>>, %arg3: memref<3x1x8x1xf32, #tpu.memory_space<vmem>>, %arg4: memref<3x3x8x1xf32, #tpu.memory_space<vmem>>, %arg5: memref<3x3x8x1xf32, #tpu.memory_space<vmem>>, %arg6: memref<1x3x8x1xf32, #tpu.memory_space<vmem>>, %arg7: memref<3x8x1xf32, #tpu.memory_space<vmem>>, %arg8: memref<3x8x1xf32, #tpu.memory_space<vmem>>, %arg9: memref<3x8x1xf32, #tpu.memory_space<vmem>>, %arg10: memref<1x8x1xf32, #tpu.memory_space<vmem>>, %arg11: memref<3x8x1xf32, #tpu.memory_space<vmem>>, %arg12: memref<3x8x1xf32, #tpu.memory_space<vmem>>, %arg13: memref<3x8x1xf32, #tpu.memory_space<vmem>>, %arg14: memref<8x128xf32, #tpu.memory_space<vmem>>) attributes {dimension_semantics = [#tpu.dimension_semantics<parallel>, #tpu.dimension_semantics<parallel>], iteration_bounds = array<i64: 1, 3>, scalar_prefetch = 0 : i64, scratch_operands = 0 : i64, tpu.core_type = #tpu.core_type<tc>, window_params = [{transform_indices = @transform_0, window_bounds = array<i64: 8, 128>}, {transform_indices = @transform_1, window_bounds = array<i64: 3, 1, 8, 1>}, {transform_indices = @transform_2, window_bounds = array<i64: 3, 3, 8, 1>}, {transform_indices = @transform_3, window_bounds = array<i64: 3, 3, 8, 1>}, {transform_indices = @transform_4, window_bounds = array<i64: 1, 3, 8, 1>}, {transform_indices = @transform_5, window_bounds = array<i64: 3, 8, 1>}, {transform_indices = @transform_6, window_bounds = array<i64: 3, 8, 1>}, {transform_indices = @transform_7, window_bounds = array<i64: 3, 8, 1>}, {transform_indices = @transform_8, window_bounds = array<i64: 1, 8, 1>}, {transform_indices = @transform_9, window_bounds = array<i64: 3, 8, 1>}, {transform_indices = @transform_10, window_bounds = array<i64: 3, 8, 1>}, {transform_indices = @transform_11, window_bounds = array<i64: 3, 8, 1>}, {transform_indices = @transform_12, window_bounds = array<i64: 8, 128>}]} {
    %c0 = arith.constant 0 : index
    %c0_0 = arith.constant 0 : index
    %0 = vector.load %arg2[%c0, %c0_0] : memref<8x128xf32, #tpu.memory_space<vmem>>, vector<8x128xf32>
    %c0_1 = arith.constant 0 : index
    %c0_2 = arith.constant 0 : index
    %c0_3 = arith.constant 0 : index
    %c0_4 = arith.constant 0 : index
    %1 = vector.load %arg3[%c0_1, %c0_2, %c0_3, %c0_4] : memref<3x1x8x1xf32, #tpu.memory_space<vmem>>, vector<1x1x8x1xf32>
    %2 = vector.shape_cast %1 : vector<1x1x8x1xf32> to vector<8x1xf32>
    %3 = vector.broadcast %2 : vector<8x1xf32> to vector<8x128xf32>
    %4 = arith.mulf %3, %0 : vector<8x128xf32>
    %c0_5 = arith.constant 0 : index
    %c0_6 = arith.constant 0 : index
    %c0_7 = arith.constant 0 : index
    %5 = vector.load %arg7[%c0_5, %c0_6, %c0_7] : memref<3x8x1xf32, #tpu.memory_space<vmem>>, vector<1x8x1xf32>
    %6 = vector.shape_cast %5 : vector<1x8x1xf32> to vector<8x1xf32>
    %7 = vector.broadcast %6 : vector<8x1xf32> to vector<8x128xf32>
    %8 = arith.addf %4, %7 : vector<8x128xf32>
    %c1 = arith.constant 1 : index
    %c0_8 = arith.constant 0 : index
    %c0_9 = arith.constant 0 : index
    %c0_10 = arith.constant 0 : index
    %9 = vector.load %arg3[%c1, %c0_8, %c0_9, %c0_10] : memref<3x1x8x1xf32, #tpu.memory_space<vmem>>, vector<1x1x8x1xf32>
    %10 = vector.shape_cast %9 : vector<1x1x8x1xf32> to vector<8x1xf32>
    %11 = vector.broadcast %10 : vector<8x1xf32> to vector<8x128xf32>
    %12 = arith.mulf %11, %0 : vector<8x128xf32>
    %c1_11 = arith.constant 1 : index
    %c0_12 = arith.constant 0 : index
    %c0_13 = arith.constant 0 : index
    %13 = vector.load %arg7[%c1_11, %c0_12, %c0_13] : memref<3x8x1xf32, #tpu.memory_space<vmem>>, vector<1x8x1xf32>
    %14 = vector.shape_cast %13 : vector<1x8x1xf32> to vector<8x1xf32>
    %15 = vector.broadcast %14 : vector<8x1xf32> to vector<8x128xf32>
    %16 = arith.addf %12, %15 : vector<8x128xf32>
    %c2 = arith.constant 2 : index
    %c0_14 = arith.constant 0 : index
    %c0_15 = arith.constant 0 : index
    %c0_16 = arith.constant 0 : index
    %17 = vector.load %arg3[%c2, %c0_14, %c0_15, %c0_16] : memref<3x1x8x1xf32, #tpu.memory_space<vmem>>, vector<1x1x8x1xf32>
    %18 = vector.shape_cast %17 : vector<1x1x8x1xf32> to vector<8x1xf32>
    %19 = vector.broadcast %18 : vector<8x1xf32> to vector<8x128xf32>
    %20 = arith.mulf %19, %0 : vector<8x128xf32>
    %c2_17 = arith.constant 2 : index
    %c0_18 = arith.constant 0 : index
    %c0_19 = arith.constant 0 : index
    %21 = vector.load %arg7[%c2_17, %c0_18, %c0_19] : memref<3x8x1xf32, #tpu.memory_space<vmem>>, vector<1x8x1xf32>
    %22 = vector.shape_cast %21 : vector<1x8x1xf32> to vector<8x1xf32>
    %23 = vector.broadcast %22 : vector<8x1xf32> to vector<8x128xf32>
    %24 = arith.addf %20, %23 : vector<8x128xf32>
    %c0_20 = arith.constant 0 : index
    %c0_21 = arith.constant 0 : index
    %c0_22 = arith.constant 0 : index
    %25 = vector.load %arg11[%c0_20, %c0_21, %c0_22] : memref<3x8x1xf32, #tpu.memory_space<vmem>>, vector<1x8x1xf32>
    %26 = vector.shape_cast %25 : vector<1x8x1xf32> to vector<8x1xf32>
    %27 = math.tanh %8 : vector<8x128xf32>
    %28 = vector.broadcast %26 : vector<8x1xf32> to vector<8x128xf32>
    %29 = arith.mulf %28, %27 : vector<8x128xf32>
    %30 = arith.addf %8, %29 : vector<8x128xf32>
    %c1_23 = arith.constant 1 : index
    %c0_24 = arith.constant 0 : index
    %c0_25 = arith.constant 0 : index
    %31 = vector.load %arg11[%c1_23, %c0_24, %c0_25] : memref<3x8x1xf32, #tpu.memory_space<vmem>>, vector<1x8x1xf32>
    %32 = vector.shape_cast %31 : vector<1x8x1xf32> to vector<8x1xf32>
    %33 = math.tanh %16 : vector<8x128xf32>
    %34 = vector.broadcast %32 : vector<8x1xf32> to vector<8x128xf32>
    %35 = arith.mulf %34, %33 : vector<8x128xf32>
    %36 = arith.addf %16, %35 : vector<8x128xf32>
    %c2_26 = arith.constant 2 : index
    %c0_27 = arith.constant 0 : index
    %c0_28 = arith.constant 0 : index
    %37 = vector.load %arg11[%c2_26, %c0_27, %c0_28] : memref<3x8x1xf32, #tpu.memory_space<vmem>>, vector<1x8x1xf32>
    %38 = vector.shape_cast %37 : vector<1x8x1xf32> to vector<8x1xf32>
    %39 = math.tanh %24 : vector<8x128xf32>
    %40 = vector.broadcast %38 : vector<8x1xf32> to vector<8x128xf32>
    %41 = arith.mulf %40, %39 : vector<8x128xf32>
    %42 = arith.addf %24, %41 : vector<8x128xf32>
    %c0_29 = arith.constant 0 : index
    %c0_30 = arith.constant 0 : index
    %c0_31 = arith.constant 0 : index
    %c0_32 = arith.constant 0 : index
    %43 = vector.load %arg4[%c0_29, %c0_30, %c0_31, %c0_32] : memref<3x3x8x1xf32, #tpu.memory_space<vmem>>, vector<1x1x8x1xf32>
    %44 = vector.shape_cast %43 : vector<1x1x8x1xf32> to vector<8x1xf32>
    %45 = vector.broadcast %44 : vector<8x1xf32> to vector<8x128xf32>
    %46 = arith.mulf %45, %30 : vector<8x128xf32>
    %c0_33 = arith.constant 0 : index
    %c1_34 = arith.constant 1 : index
    %c0_35 = arith.constant 0 : index
    %c0_36 = arith.constant 0 : index
    %47 = vector.load %arg4[%c0_33, %c1_34, %c0_35, %c0_36] : memref<3x3x8x1xf32, #tpu.memory_space<vmem>>, vector<1x1x8x1xf32>
    %48 = vector.shape_cast %47 : vector<1x1x8x1xf32> to vector<8x1xf32>
    %49 = vector.broadcast %48 : vector<8x1xf32> to vector<8x128xf32>
    %50 = arith.mulf %49, %36 : vector<8x128xf32>
    %51 = arith.addf %46, %50 : vector<8x128xf32>
    %c0_37 = arith.constant 0 : index
    %c2_38 = arith.constant 2 : index
    %c0_39 = arith.constant 0 : index
    %c0_40 = arith.constant 0 : index
    %52 = vector.load %arg4[%c0_37, %c2_38, %c0_39, %c0_40] : memref<3x3x8x1xf32, #tpu.memory_space<vmem>>, vector<1x1x8x1xf32>
    %53 = vector.shape_cast %52 : vector<1x1x8x1xf32> to vector<8x1xf32>
    %54 = vector.broadcast %53 : vector<8x1xf32> to vector<8x128xf32>
    %55 = arith.mulf %54, %42 : vector<8x128xf32>
    %56 = arith.addf %51, %55 : vector<8x128xf32>
    %c0_41 = arith.constant 0 : index
    %c0_42 = arith.constant 0 : index
    %c0_43 = arith.constant 0 : index
    %57 = vector.load %arg8[%c0_41, %c0_42, %c0_43] : memref<3x8x1xf32, #tpu.memory_space<vmem>>, vector<1x8x1xf32>
    %58 = vector.shape_cast %57 : vector<1x8x1xf32> to vector<8x1xf32>
    %59 = vector.broadcast %58 : vector<8x1xf32> to vector<8x128xf32>
    %60 = arith.addf %56, %59 : vector<8x128xf32>
    %c1_44 = arith.constant 1 : index
    %c0_45 = arith.constant 0 : index
    %c0_46 = arith.constant 0 : index
    %c0_47 = arith.constant 0 : index
    %61 = vector.load %arg4[%c1_44, %c0_45, %c0_46, %c0_47] : memref<3x3x8x1xf32, #tpu.memory_space<vmem>>, vector<1x1x8x1xf32>
    %62 = vector.shape_cast %61 : vector<1x1x8x1xf32> to vector<8x1xf32>
    %63 = vector.broadcast %62 : vector<8x1xf32> to vector<8x128xf32>
    %64 = arith.mulf %63, %30 : vector<8x128xf32>
    %c1_48 = arith.constant 1 : index
    %c1_49 = arith.constant 1 : index
    %c0_50 = arith.constant 0 : index
    %c0_51 = arith.constant 0 : index
    %65 = vector.load %arg4[%c1_48, %c1_49, %c0_50, %c0_51] : memref<3x3x8x1xf32, #tpu.memory_space<vmem>>, vector<1x1x8x1xf32>
    %66 = vector.shape_cast %65 : vector<1x1x8x1xf32> to vector<8x1xf32>
    %67 = vector.broadcast %66 : vector<8x1xf32> to vector<8x128xf32>
    %68 = arith.mulf %67, %36 : vector<8x128xf32>
    %69 = arith.addf %64, %68 : vector<8x128xf32>
    %c1_52 = arith.constant 1 : index
    %c2_53 = arith.constant 2 : index
    %c0_54 = arith.constant 0 : index
    %c0_55 = arith.constant 0 : index
    %70 = vector.load %arg4[%c1_52, %c2_53, %c0_54, %c0_55] : memref<3x3x8x1xf32, #tpu.memory_space<vmem>>, vector<1x1x8x1xf32>
    %71 = vector.shape_cast %70 : vector<1x1x8x1xf32> to vector<8x1xf32>
    %72 = vector.broadcast %71 : vector<8x1xf32> to vector<8x128xf32>
    %73 = arith.mulf %72, %42 : vector<8x128xf32>
    %74 = arith.addf %69, %73 : vector<8x128xf32>
    %c1_56 = arith.constant 1 : index
    %c0_57 = arith.constant 0 : index
    %c0_58 = arith.constant 0 : index
    %75 = vector.load %arg8[%c1_56, %c0_57, %c0_58] : memref<3x8x1xf32, #tpu.memory_space<vmem>>, vector<1x8x1xf32>
    %76 = vector.shape_cast %75 : vector<1x8x1xf32> to vector<8x1xf32>
    %77 = vector.broadcast %76 : vector<8x1xf32> to vector<8x128xf32>
    %78 = arith.addf %74, %77 : vector<8x128xf32>
    %c2_59 = arith.constant 2 : index
    %c0_60 = arith.constant 0 : index
    %c0_61 = arith.constant 0 : index
    %c0_62 = arith.constant 0 : index
    %79 = vector.load %arg4[%c2_59, %c0_60, %c0_61, %c0_62] : memref<3x3x8x1xf32, #tpu.memory_space<vmem>>, vector<1x1x8x1xf32>
    %80 = vector.shape_cast %79 : vector<1x1x8x1xf32> to vector<8x1xf32>
    %81 = vector.broadcast %80 : vector<8x1xf32> to vector<8x128xf32>
    %82 = arith.mulf %81, %30 : vector<8x128xf32>
    %c2_63 = arith.constant 2 : index
    %c1_64 = arith.constant 1 : index
    %c0_65 = arith.constant 0 : index
    %c0_66 = arith.constant 0 : index
    %83 = vector.load %arg4[%c2_63, %c1_64, %c0_65, %c0_66] : memref<3x3x8x1xf32, #tpu.memory_space<vmem>>, vector<1x1x8x1xf32>
    %84 = vector.shape_cast %83 : vector<1x1x8x1xf32> to vector<8x1xf32>
    %85 = vector.broadcast %84 : vector<8x1xf32> to vector<8x128xf32>
    %86 = arith.mulf %85, %36 : vector<8x128xf32>
    %87 = arith.addf %82, %86 : vector<8x128xf32>
    %c2_67 = arith.constant 2 : index
    %c2_68 = arith.constant 2 : index
    %c0_69 = arith.constant 0 : index
    %c0_70 = arith.constant 0 : index
    %88 = vector.load %arg4[%c2_67, %c2_68, %c0_69, %c0_70] : memref<3x3x8x1xf32, #tpu.memory_space<vmem>>, vector<1x1x8x1xf32>
    %89 = vector.shape_cast %88 : vector<1x1x8x1xf32> to vector<8x1xf32>
    %90 = vector.broadcast %89 : vector<8x1xf32> to vector<8x128xf32>
    %91 = arith.mulf %90, %42 : vector<8x128xf32>
    %92 = arith.addf %87, %91 : vector<8x128xf32>
    %c2_71 = arith.constant 2 : index
    %c0_72 = arith.constant 0 : index
    %c0_73 = arith.constant 0 : index
    %93 = vector.load %arg8[%c2_71, %c0_72, %c0_73] : memref<3x8x1xf32, #tpu.memory_space<vmem>>, vector<1x8x1xf32>
    %94 = vector.shape_cast %93 : vector<1x8x1xf32> to vector<8x1xf32>
    %95 = vector.broadcast %94 : vector<8x1xf32> to vector<8x128xf32>
    %96 = arith.addf %92, %95 : vector<8x128xf32>
    %c0_74 = arith.constant 0 : index
    %c0_75 = arith.constant 0 : index
    %c0_76 = arith.constant 0 : index
    %97 = vector.load %arg12[%c0_74, %c0_75, %c0_76] : memref<3x8x1xf32, #tpu.memory_space<vmem>>, vector<1x8x1xf32>
    %98 = vector.shape_cast %97 : vector<1x8x1xf32> to vector<8x1xf32>
    %99 = math.tanh %60 : vector<8x128xf32>
    %100 = vector.broadcast %98 : vector<8x1xf32> to vector<8x128xf32>
    %101 = arith.mulf %100, %99 : vector<8x128xf32>
    %102 = arith.addf %60, %101 : vector<8x128xf32>
    %c1_77 = arith.constant 1 : index
    %c0_78 = arith.constant 0 : index
    %c0_79 = arith.constant 0 : index
    %103 = vector.load %arg12[%c1_77, %c0_78, %c0_79] : memref<3x8x1xf32, #tpu.memory_space<vmem>>, vector<1x8x1xf32>
    %104 = vector.shape_cast %103 : vector<1x8x1xf32> to vector<8x1xf32>
    %105 = math.tanh %78 : vector<8x128xf32>
    %106 = vector.broadcast %104 : vector<8x1xf32> to vector<8x128xf32>
    %107 = arith.mulf %106, %105 : vector<8x128xf32>
    %108 = arith.addf %78, %107 : vector<8x128xf32>
    %c2_80 = arith.constant 2 : index
    %c0_81 = arith.constant 0 : index
    %c0_82 = arith.constant 0 : index
    %109 = vector.load %arg12[%c2_80, %c0_81, %c0_82] : memref<3x8x1xf32, #tpu.memory_space<vmem>>, vector<1x8x1xf32>
    %110 = vector.shape_cast %109 : vector<1x8x1xf32> to vector<8x1xf32>
    %111 = math.tanh %96 : vector<8x128xf32>
    %112 = vector.broadcast %110 : vector<8x1xf32> to vector<8x128xf32>
    %113 = arith.mulf %112, %111 : vector<8x128xf32>
    %114 = arith.addf %96, %113 : vector<8x128xf32>
    %c0_83 = arith.constant 0 : index
    %c0_84 = arith.constant 0 : index
    %c0_85 = arith.constant 0 : index
    %c0_86 = arith.constant 0 : index
    %115 = vector.load %arg5[%c0_83, %c0_84, %c0_85, %c0_86] : memref<3x3x8x1xf32, #tpu.memory_space<vmem>>, vector<1x1x8x1xf32>
    %116 = vector.shape_cast %115 : vector<1x1x8x1xf32> to vector<8x1xf32>
    %117 = vector.broadcast %116 : vector<8x1xf32> to vector<8x128xf32>
    %118 = arith.mulf %117, %102 : vector<8x128xf32>
    %c0_87 = arith.constant 0 : index
    %c1_88 = arith.constant 1 : index
    %c0_89 = arith.constant 0 : index
    %c0_90 = arith.constant 0 : index
    %119 = vector.load %arg5[%c0_87, %c1_88, %c0_89, %c0_90] : memref<3x3x8x1xf32, #tpu.memory_space<vmem>>, vector<1x1x8x1xf32>
    %120 = vector.shape_cast %119 : vector<1x1x8x1xf32> to vector<8x1xf32>
    %121 = vector.broadcast %120 : vector<8x1xf32> to vector<8x128xf32>
    %122 = arith.mulf %121, %108 : vector<8x128xf32>
    %123 = arith.addf %118, %122 : vector<8x128xf32>
    %c0_91 = arith.constant 0 : index
    %c2_92 = arith.constant 2 : index
    %c0_93 = arith.constant 0 : index
    %c0_94 = arith.constant 0 : index
    %124 = vector.load %arg5[%c0_91, %c2_92, %c0_93, %c0_94] : memref<3x3x8x1xf32, #tpu.memory_space<vmem>>, vector<1x1x8x1xf32>
    %125 = vector.shape_cast %124 : vector<1x1x8x1xf32> to vector<8x1xf32>
    %126 = vector.broadcast %125 : vector<8x1xf32> to vector<8x128xf32>
    %127 = arith.mulf %126, %114 : vector<8x128xf32>
    %128 = arith.addf %123, %127 : vector<8x128xf32>
    %c0_95 = arith.constant 0 : index
    %c0_96 = arith.constant 0 : index
    %c0_97 = arith.constant 0 : index
    %129 = vector.load %arg9[%c0_95, %c0_96, %c0_97] : memref<3x8x1xf32, #tpu.memory_space<vmem>>, vector<1x8x1xf32>
    %130 = vector.shape_cast %129 : vector<1x8x1xf32> to vector<8x1xf32>
    %131 = vector.broadcast %130 : vector<8x1xf32> to vector<8x128xf32>
    %132 = arith.addf %128, %131 : vector<8x128xf32>
    %c1_98 = arith.constant 1 : index
    %c0_99 = arith.constant 0 : index
    %c0_100 = arith.constant 0 : index
    %c0_101 = arith.constant 0 : index
    %133 = vector.load %arg5[%c1_98, %c0_99, %c0_100, %c0_101] : memref<3x3x8x1xf32, #tpu.memory_space<vmem>>, vector<1x1x8x1xf32>
    %134 = vector.shape_cast %133 : vector<1x1x8x1xf32> to vector<8x1xf32>
    %135 = vector.broadcast %134 : vector<8x1xf32> to vector<8x128xf32>
    %136 = arith.mulf %135, %102 : vector<8x128xf32>
    %c1_102 = arith.constant 1 : index
    %c1_103 = arith.constant 1 : index
    %c0_104 = arith.constant 0 : index
    %c0_105 = arith.constant 0 : index
    %137 = vector.load %arg5[%c1_102, %c1_103, %c0_104, %c0_105] : memref<3x3x8x1xf32, #tpu.memory_space<vmem>>, vector<1x1x8x1xf32>
    %138 = vector.shape_cast %137 : vector<1x1x8x1xf32> to vector<8x1xf32>
    %139 = vector.broadcast %138 : vector<8x1xf32> to vector<8x128xf32>
    %140 = arith.mulf %139, %108 : vector<8x128xf32>
    %141 = arith.addf %136, %140 : vector<8x128xf32>
    %c1_106 = arith.constant 1 : index
    %c2_107 = arith.constant 2 : index
    %c0_108 = arith.constant 0 : index
    %c0_109 = arith.constant 0 : index
    %142 = vector.load %arg5[%c1_106, %c2_107, %c0_108, %c0_109] : memref<3x3x8x1xf32, #tpu.memory_space<vmem>>, vector<1x1x8x1xf32>
    %143 = vector.shape_cast %142 : vector<1x1x8x1xf32> to vector<8x1xf32>
    %144 = vector.broadcast %143 : vector<8x1xf32> to vector<8x128xf32>
    %145 = arith.mulf %144, %114 : vector<8x128xf32>
    %146 = arith.addf %141, %145 : vector<8x128xf32>
    %c1_110 = arith.constant 1 : index
    %c0_111 = arith.constant 0 : index
    %c0_112 = arith.constant 0 : index
    %147 = vector.load %arg9[%c1_110, %c0_111, %c0_112] : memref<3x8x1xf32, #tpu.memory_space<vmem>>, vector<1x8x1xf32>
    %148 = vector.shape_cast %147 : vector<1x8x1xf32> to vector<8x1xf32>
    %149 = vector.broadcast %148 : vector<8x1xf32> to vector<8x128xf32>
    %150 = arith.addf %146, %149 : vector<8x128xf32>
    %c2_113 = arith.constant 2 : index
    %c0_114 = arith.constant 0 : index
    %c0_115 = arith.constant 0 : index
    %c0_116 = arith.constant 0 : index
    %151 = vector.load %arg5[%c2_113, %c0_114, %c0_115, %c0_116] : memref<3x3x8x1xf32, #tpu.memory_space<vmem>>, vector<1x1x8x1xf32>
    %152 = vector.shape_cast %151 : vector<1x1x8x1xf32> to vector<8x1xf32>
    %153 = vector.broadcast %152 : vector<8x1xf32> to vector<8x128xf32>
    %154 = arith.mulf %153, %102 : vector<8x128xf32>
    %c2_117 = arith.constant 2 : index
    %c1_118 = arith.constant 1 : index
    %c0_119 = arith.constant 0 : index
    %c0_120 = arith.constant 0 : index
    %155 = vector.load %arg5[%c2_117, %c1_118, %c0_119, %c0_120] : memref<3x3x8x1xf32, #tpu.memory_space<vmem>>, vector<1x1x8x1xf32>
    %156 = vector.shape_cast %155 : vector<1x1x8x1xf32> to vector<8x1xf32>
    %157 = vector.broadcast %156 : vector<8x1xf32> to vector<8x128xf32>
    %158 = arith.mulf %157, %108 : vector<8x128xf32>
    %159 = arith.addf %154, %158 : vector<8x128xf32>
    %c2_121 = arith.constant 2 : index
    %c2_122 = arith.constant 2 : index
    %c0_123 = arith.constant 0 : index
    %c0_124 = arith.constant 0 : index
    %160 = vector.load %arg5[%c2_121, %c2_122, %c0_123, %c0_124] : memref<3x3x8x1xf32, #tpu.memory_space<vmem>>, vector<1x1x8x1xf32>
    %161 = vector.shape_cast %160 : vector<1x1x8x1xf32> to vector<8x1xf32>
    %162 = vector.broadcast %161 : vector<8x1xf32> to vector<8x128xf32>
    %163 = arith.mulf %162, %114 : vector<8x128xf32>
    %164 = arith.addf %159, %163 : vector<8x128xf32>
    %c2_125 = arith.constant 2 : index
    %c0_126 = arith.constant 0 : index
    %c0_127 = arith.constant 0 : index
    %165 = vector.load %arg9[%c2_125, %c0_126, %c0_127] : memref<3x8x1xf32, #tpu.memory_space<vmem>>, vector<1x8x1xf32>
    %166 = vector.shape_cast %165 : vector<1x8x1xf32> to vector<8x1xf32>
    %167 = vector.broadcast %166 : vector<8x1xf32> to vector<8x128xf32>
    %168 = arith.addf %164, %167 : vector<8x128xf32>
    %c0_128 = arith.constant 0 : index
    %c0_129 = arith.constant 0 : index
    %c0_130 = arith.constant 0 : index
    %169 = vector.load %arg13[%c0_128, %c0_129, %c0_130] : memref<3x8x1xf32, #tpu.memory_space<vmem>>, vector<1x8x1xf32>
    %170 = vector.shape_cast %169 : vector<1x8x1xf32> to vector<8x1xf32>
    %171 = math.tanh %132 : vector<8x128xf32>
    %172 = vector.broadcast %170 : vector<8x1xf32> to vector<8x128xf32>
    %173 = arith.mulf %172, %171 : vector<8x128xf32>
    %174 = arith.addf %132, %173 : vector<8x128xf32>
    %c1_131 = arith.constant 1 : index
    %c0_132 = arith.constant 0 : index
    %c0_133 = arith.constant 0 : index
    %175 = vector.load %arg13[%c1_131, %c0_132, %c0_133] : memref<3x8x1xf32, #tpu.memory_space<vmem>>, vector<1x8x1xf32>
    %176 = vector.shape_cast %175 : vector<1x8x1xf32> to vector<8x1xf32>
    %177 = math.tanh %150 : vector<8x128xf32>
    %178 = vector.broadcast %176 : vector<8x1xf32> to vector<8x128xf32>
    %179 = arith.mulf %178, %177 : vector<8x128xf32>
    %180 = arith.addf %150, %179 : vector<8x128xf32>
    %c2_134 = arith.constant 2 : index
    %c0_135 = arith.constant 0 : index
    %c0_136 = arith.constant 0 : index
    %181 = vector.load %arg13[%c2_134, %c0_135, %c0_136] : memref<3x8x1xf32, #tpu.memory_space<vmem>>, vector<1x8x1xf32>
    %182 = vector.shape_cast %181 : vector<1x8x1xf32> to vector<8x1xf32>
    %183 = math.tanh %168 : vector<8x128xf32>
    %184 = vector.broadcast %182 : vector<8x1xf32> to vector<8x128xf32>
    %185 = arith.mulf %184, %183 : vector<8x128xf32>
    %186 = arith.addf %168, %185 : vector<8x128xf32>
    %c0_137 = arith.constant 0 : index
    %c0_138 = arith.constant 0 : index
    %c0_139 = arith.constant 0 : index
    %c0_140 = arith.constant 0 : index
    %187 = vector.load %arg6[%c0_137, %c0_138, %c0_139, %c0_140] : memref<1x3x8x1xf32, #tpu.memory_space<vmem>>, vector<1x1x8x1xf32>
    %188 = vector.shape_cast %187 : vector<1x1x8x1xf32> to vector<8x1xf32>
    %189 = vector.broadcast %188 : vector<8x1xf32> to vector<8x128xf32>
    %190 = arith.mulf %189, %174 : vector<8x128xf32>
    %c0_141 = arith.constant 0 : index
    %c1_142 = arith.constant 1 : index
    %c0_143 = arith.constant 0 : index
    %c0_144 = arith.constant 0 : index
    %191 = vector.load %arg6[%c0_141, %c1_142, %c0_143, %c0_144] : memref<1x3x8x1xf32, #tpu.memory_space<vmem>>, vector<1x1x8x1xf32>
    %192 = vector.shape_cast %191 : vector<1x1x8x1xf32> to vector<8x1xf32>
    %193 = vector.broadcast %192 : vector<8x1xf32> to vector<8x128xf32>
    %194 = arith.mulf %193, %180 : vector<8x128xf32>
    %195 = arith.addf %190, %194 : vector<8x128xf32>
    %c0_145 = arith.constant 0 : index
    %c2_146 = arith.constant 2 : index
    %c0_147 = arith.constant 0 : index
    %c0_148 = arith.constant 0 : index
    %196 = vector.load %arg6[%c0_145, %c2_146, %c0_147, %c0_148] : memref<1x3x8x1xf32, #tpu.memory_space<vmem>>, vector<1x1x8x1xf32>
    %197 = vector.shape_cast %196 : vector<1x1x8x1xf32> to vector<8x1xf32>
    %198 = vector.broadcast %197 : vector<8x1xf32> to vector<8x128xf32>
    %199 = arith.mulf %198, %186 : vector<8x128xf32>
    %200 = arith.addf %195, %199 : vector<8x128xf32>
    %c0_149 = arith.constant 0 : index
    %c0_150 = arith.constant 0 : index
    %c0_151 = arith.constant 0 : index
    %201 = vector.load %arg10[%c0_149, %c0_150, %c0_151] : memref<1x8x1xf32, #tpu.memory_space<vmem>>, vector<1x8x1xf32>
    %202 = vector.shape_cast %201 : vector<1x8x1xf32> to vector<8x1xf32>
    %203 = vector.broadcast %202 : vector<8x1xf32> to vector<8x128xf32>
    %204 = arith.addf %200, %203 : vector<8x128xf32>
    %c0_152 = arith.constant 0 : index
    %c0_153 = arith.constant 0 : index
    %205 = vector.load %arg14[%c0_152, %c0_153] : memref<8x128xf32, #tpu.memory_space<vmem>>, vector<8x128xf32>
    tpu.vector_store %arg14[%c0_152, %c0_153], %204 {strides = array<i32>} : memref<8x128xf32, #tpu.memory_space<vmem>>, vector<8x128xf32>,
    return
  }
  func.func @transform_0(%arg0: i32, %arg1: i32) -> (i32, i32) {
    %c0_i32 = arith.constant 0 : i32
    return %arg0, %arg1 : i32, i32
  }
  func.func @transform_1(%arg0: i32, %arg1: i32) -> (i32, i32, i32, i32) {
    %c0_i32 = arith.constant 0 : i32
    %c0_i32_0 = arith.constant 0 : i32
    %c0_i32_1 = arith.constant 0 : i32
    %c0_i32_2 = arith.constant 0 : i32
    return %c0_i32, %c0_i32_0, %arg0, %c0_i32_1 : i32, i32, i32, i32
  }
  func.func @transform_2(%arg0: i32, %arg1: i32) -> (i32, i32, i32, i32) {
    %c0_i32 = arith.constant 0 : i32
    %c0_i32_0 = arith.constant 0 : i32
    %c0_i32_1 = arith.constant 0 : i32
    %c0_i32_2 = arith.constant 0 : i32
    return %c0_i32, %c0_i32_0, %arg0, %c0_i32_1 : i32, i32, i32, i32
  }
  func.func @transform_3(%arg0: i32, %arg1: i32) -> (i32, i32, i32, i32) {
    %c0_i32 = arith.constant 0 : i32
    %c0_i32_0 = arith.constant 0 : i32
    %c0_i32_1 = arith.constant 0 : i32
    %c0_i32_2 = arith.constant 0 : i32
    return %c0_i32, %c0_i32_0, %arg0, %c0_i32_1 : i32, i32, i32, i32
  }
  func.func @transform_4(%arg0: i32, %arg1: i32) -> (i32, i32, i32, i32) {
    %c0_i32 = arith.constant 0 : i32
    %c0_i32_0 = arith.constant 0 : i32
    %c0_i32_1 = arith.constant 0 : i32
    %c0_i32_2 = arith.constant 0 : i32
    return %c0_i32, %c0_i32_0, %arg0, %c0_i32_1 : i32, i32, i32, i32
  }
  func.func @transform_5(%arg0: i32, %arg1: i32) -> (i32, i32, i32) {
    %c0_i32 = arith.constant 0 : i32
    %c0_i32_0 = arith.constant 0 : i32
    %c0_i32_1 = arith.constant 0 : i32
    return %c0_i32, %arg0, %c0_i32_0 : i32, i32, i32
  }
  func.func @transform_6(%arg0: i32, %arg1: i32) -> (i32, i32, i32) {
    %c0_i32 = arith.constant 0 : i32
    %c0_i32_0 = arith.constant 0 : i32
    %c0_i32_1 = arith.constant 0 : i32
    return %c0_i32, %arg0, %c0_i32_0 : i32, i32, i32
  }
  func.func @transform_7(%arg0: i32, %arg1: i32) -> (i32, i32, i32) {
    %c0_i32 = arith.constant 0 : i32
    %c0_i32_0 = arith.constant 0 : i32
    %c0_i32_1 = arith.constant 0 : i32
    return %c0_i32, %arg0, %c0_i32_0 : i32, i32, i32
  }
  func.func @transform_8(%arg0: i32, %arg1: i32) -> (i32, i32, i32) {
    %c0_i32 = arith.constant 0 : i32
    %c0_i32_0 = arith.constant 0 : i32
    %c0_i32_1 = arith.constant 0 : i32
    return %c0_i32, %arg0, %c0_i32_0 : i32, i32, i32
  }
  func.func @transform_9(%arg0: i32, %arg1: i32) -> (i32, i32, i32) {
    %c0_i32 = arith.constant 0 : i32
    %c0_i32_0 = arith.constant 0 : i32
    %c0_i32_1 = arith.constant 0 : i32
    return %c0_i32, %arg0, %c0_i32_0 : i32, i32, i32
  }
  func.func @transform_10(%arg0: i32, %arg1: i32) -> (i32, i32, i32) {
    %c0_i32 = arith.constant 0 : i32
    %c0_i32_0 = arith.constant 0 : i32
    %c0_i32_1 = arith.constant 0 : i32
    return %c0_i32, %arg0, %c0_i32_0 : i32, i32, i32
  }
  func.func @transform_11(%arg0: i32, %arg1: i32) -> (i32, i32, i32) {
    %c0_i32 = arith.constant 0 : i32
    %c0_i32_0 = arith.constant 0 : i32
    %c0_i32_1 = arith.constant 0 : i32
    return %c0_i32, %arg0, %c0_i32_0 : i32, i32, i32
  }
  func.func @transform_12(%arg0: i32, %arg1: i32) -> (i32, i32) {
    %c0_i32 = arith.constant 0 : i32
    return %arg0, %arg1 : i32, i32
  }
}

</mosaic_0001>

<bundles_post_ra>
// kernel: tpu_custom_call.1
= control target key start
LH: loop header
LB: loop body
LE: loop exit
PB: predicated region body
PF: predicated region fallthrough
CT: control target
= control target key end

     0   :  { %s1765_s0 = inlined_call_operand.vmem [shape: f32[8,384], index: 0, kind: input, shape index: {}]   ;;  %s1766_s1 = inlined_call_operand.vmem [shape: f32[3,1,8,1], index: 1, kind: input, shape index: {}]   ;;  %s1767_s2 = inlined_call_operand.vmem [shape: f32[3,3,8,1], index: 2, kind: input, shape index: {}]   ;;  %s1768_s3 = inlined_call_operand.vmem [shape: f32[3,3,8,1], index: 3, kind: input, shape index: {}]   ;;  %s1769_s4 = inlined_call_operand.vmem [shape: f32[1,3,8,1], index: 4, kind: input, shape index: {}]   ;;  %s1770_s5 = inlined_call_operand.vmem [shape: f32[3,8,1], index: 5, kind: input, shape index: {}]   ;;  %s1771_s6 = inlined_call_operand.vmem [shape: f32[3,8,1], index: 6, kind: input, shape index: {}]   ;;  %s1772_s7 = inlined_call_operand.vmem [shape: f32[3,8,1], index: 7, kind: input, shape index: {}]   ;;  %s1773_s8 = inlined_call_operand.vmem [shape: f32[1,8,1], index: 8, kind: input, shape index: {}]   ;;  %s1774_s9 = inlined_call_operand.vmem [shape: f32[3,8,1], index: 9, kind: input, shape index: {}]   ;;  %s1775_s10 = inlined_call_operand.vmem [shape: f32[3,8,1], index: 10, kind: input, shape index: {}]   ;;  %s1776_s11 = inlined_call_operand.vmem [shape: f32[3,8,1], index: 11, kind: input, shape index: {}]   ;;  %s1777_s12 = inlined_call_operand.hbm [shape: f32[8,384], index: 12, kind: output, shape index: {}]  }
   0x1   :  { %1780 = sst [smem:[#allocation7_spill]] %s1766_s1 }
   0x2   :  { %17 = vsyncpa [#allocation3], 0 }
   0x3   :  { %19 = vsyncpa [#allocation3 + $0x1], 0  ;;  %s1524_s21 = smov 0   ;;  %s1526_s22 = smov 0  }
   0x4   :  { %s1528_s23 = smov 0   ;;  %s1530_s24 = smov 0  }
   0x5   :  { %s1532_s25 = smov 0   ;;  %s1534_s26 = smov 0  }
   0x6 LB: > { %1781 = sst [smem:[#allocation5_spill]] %s1451_s25  ;;  %s1247_s27 = sadd.s32 4294967295, %s1455_s26   ;;  %s1455_s26 = sphi %s1534_s26, %s25_s26   ;;  %s1451_s25 = sphi %s1532_s25, %s1787_s25   ;;  %s1447_s24 = sphi %s1530_s24, %s1786_s24   ;;  %s1443_s23 = sphi %s1528_s23, %s1790_s23   ;;  %s1439_s22 = sphi %s1526_s22, %s1789_s22   ;;  %s1435_s21 = sphi %s1524_s21, %s1788_s21  }
   0x7   : > { %s1248_s28 = sadd.s32 4294967294, %s1455_s26   ;;  %s34_s29 = sadd.s32 1, %s1451_s25 }
   0x8   : > { %s360_s30 = sadd.s32 1, %s1443_s23  ;;  %p35_p0 = scmp.ge.s32.totalorder %s34_s29, 3 }
   0x9   : > { %p370_p1 = scmp.ne.s32.totalorder %s1443_s23, %s1439_s22  ;;  %p371_p2 = scmp.eq.s32.totalorder %s1247_s27, 2 }
   0xa   : > { %p376_p3 = scmp.ne.s32.totalorder %s1439_s22, %s1435_s21  ;;  %s1792_s29 = smov (%p35_p0, %s34_s29), 0 }
   0xb   : > { %1782 = sst [smem:[#allocation6_spill]] %s1792_s29  ;;  %p1564_p4 = por %p371_p2, %p370_p1 }
   0xc   : > { %p377_p5 = scmp.eq.s32.totalorder %s1248_s28, 2  ;;  %s356_s14 = ssub.s32 %s1451_s25, %s1792_s29 }
   0xd   : > { %p1262_p6 = scmp.ge.s32.totalorder %s1455_s26, 1  ;;  %p358_p7 = scmp.eq.s32.totalorder %s356_s14, 0 }
   0xe   : > { %p1571_p8 = por %p377_p5, %p376_p3  ;;  %p483_p9 = scmp.lt.s32.totalorder %s1455_s26, 4 }
   0xf   : > { %s1577_s16 = scalar_select %p358_p7, %s1443_s23, %s360_s30  }
  0x10   : > { %p484_p10 = pnand %p1262_p6, %p483_p9 }
  0x11   : > { %s1785_s1 = sld [smem:[#allocation7_spill]] (!%p484_p10)  ;;  %v1457_v2 = vmov (!%p484_p10), 0   ;;  %v1266_v3 = vld [vmem:[%s1770_s5 + $0x8] sm:$0xff] (!%p484_p10)  ;;  %v632_v4 = vld [vmem:[%s1770_s5] sm:$0xff] (!%p484_p10)  ;;  %v1268_v5 = vld [vmem:[%s1770_s5 + $0x10] sm:$0xff] (!%p484_p10)  ;;  %p574_p11 = scmp.lt.s32.totalorder (!%p484_p10), %s1447_s24, 2 }
  0x12   : > { %487 = sbr.rel (%p484_p10) target bundleno = 260 (0x104), region = 68  ;;  %1358 = vset.pattern.permute.xlu1 (!%p484_p10), %v1457_v2  ;;  %1357 = vset.pattern.permute.xlu0 (!%p484_p10), %v1457_v2  ;;  %v1269_v7 = vld [vmem:[%s1774_s9 + $0x8] sm:$0xff] (!%p484_p10)  ;;  %v671_v8 = vld [vmem:[%s1774_s9] sm:$0xff] (!%p484_p10)  ;;  %v1270_v10 = vld [vmem:[%s1774_s9 + $0x10] sm:$0xff] (!%p484_p10)  ;;  %s1298_s20 = sshll.u32 (!%p484_p10), %s1447_s24, 7 }
  0x13   : > { %v700_v9 = vld [vmem:[%s1767_s2] sm:$0xff] (!%p484_p10)  ;;  %v1272_v11 = vld [vmem:[%s1767_s2 + $0x10] sm:$0xff] (!%p484_p10)  ;;  %v1271_v12 = vld [vmem:[%s1767_s2 + $0x8] sm:$0xff] (!%p484_p10) }
  0x14   : > { %v1273_v13 = vld [vmem:[%s1767_s2 + $0x18] sm:$0xff] (!%p484_p10)  ;;  %v725_v14 = vld [vmem:[%s1771_s6] sm:$0xff] (!%p484_p10)  ;;  %v1275_v15 = vld [vmem:[%s1767_s2 + $0x28] sm:$0xff] (!%p484_p10) }
  0x15   : > { %v1274_v16 = vld [vmem:[%s1767_s2 + $0x20] sm:$0xff] (!%p484_p10)  ;;  %v1278_v17 = vld [vmem:[%s1767_s2 + $0x38] sm:$0xff] (!%p484_p10)  ;;  %v1277_v18 = vld [vmem:[%s1767_s2 + $0x30] sm:$0xff] (!%p484_p10) }
  0x16   : > { %v1276_v19 = vld [vmem:[%s1771_s6 + $0x8] sm:$0xff] (!%p484_p10)  ;;  %v1279_v20 = vld [vmem:[%s1767_s2 + $0x40] sm:$0xff] (!%p484_p10)  ;;  %v1280_v22 = vld [vmem:[%s1771_s6 + $0x10] sm:$0xff] (!%p484_p10) }
  0x17   : > { %v1265_v0 = vld [vmem:[%s1785_s1 + $0x8] sm:$0xff] (!%p484_p10)  ;;  %v625_v1 = vld [vmem:[%s1785_s1] sm:$0xff] (!%p484_p10)  ;;  %v1267_v6 = vld [vmem:[%s1785_s1 + $0x10] sm:$0xff] (!%p484_p10) }
  0x18   : > { %643 = vperm.xlu1 (!%p484_p10), %1358, %v1265_v0   ;;  %628 = vperm.xlu0 (!%p484_p10), %1357, %v625_v1   ;;  %v800_v21 = vld [vmem:[%s1775_s10] sm:$0xff] (!%p484_p10)  ;;  %v1282_v23 = vld [vmem:[%s1775_s10 + $0x10] sm:$0xff] (!%p484_p10)  ;;  %v1281_v24 = vld [vmem:[%s1775_s10 + $0x8] sm:$0xff] (!%p484_p10) }
  0x19   : > { %v1283_v25 = vld [vmem:[%s1768_s3 + $0x8] sm:$0xff]  ;;  %v829_v26 = vld [vmem:[%s1768_s3] sm:$0xff]  ;;  %v1285_v28 = vld [vmem:[%s1768_s3 + $0x18] sm:$0xff]  ;;  %s575_s30 = scalar_select %p574_p11, %s1447_s24, 2 }
  0x1a   : > { %v1286_v27 = vld [vmem:[%s1768_s3 + $0x20] sm:$0xff]  ;;  %v1287_v29 = vld [vmem:[%s1768_s3 + $0x28] sm:$0xff]  ;;  %v1284_v30 = vld [vmem:[%s1768_s3 + $0x10] sm:$0xff]  ;;  %s1458_s24 = smov [#allocation2]  }
  0x1b   : > { %v1290_v31 = vld [vmem:[%s1768_s3 + $0x38] sm:$0xff]  ;;  %v1289_v32 = vld [vmem:[%s1768_s3 + $0x30] sm:$0xff]  ;;  %v854_v33 = vld [vmem:[%s1772_s7] sm:$0xff]  ;;  %s1264_s14 = sshll.u32 %s575_s30, 3  ;;  %s1718_s30 = scalar_lea.hbm %s1777_s12, %s1298_s20 }
  0x1c   : > { %651 = vperm.xlu1 %1358, %v1266_v3   ;;  %635 = vperm.xlu0 %1357, %v632_v4   ;;  %v1291_v34 = vld [vmem:[%s1768_s3 + $0x40] sm:$0xff]  ;;  %v1292_v35 = vld [vmem:[%s1772_s7 + $0x10] sm:$0xff]  ;;  %v1288_v36 = vld [vmem:[%s1772_s7 + $0x8] sm:$0xff]  ;;  %s579_s1 = scalar_lea.vmem %s1765_s0, %s1264_s14  ;;  %s1381_s18 = sshll.u32 %s1458_s24, 4  ;;  %s1382_s18 = int_to_ptr.vmem [resolvable:$false] %s1381_s18 }
  0x1d   : > { %v1293_v37 = vld [vmem:[%s1776_s11 + $0x8] sm:$0xff]  ;;  %v929_v38 = vld [vmem:[%s1776_s11] sm:$0xff]  ;;  %v1294_v40 = vld [vmem:[%s1776_s11 + $0x10] sm:$0xff] }
  0x1e   : > { %v958_v39 = vld [vmem:[%s1769_s4] sm:$0xff]  ;;  %v1296_v41 = vld [vmem:[%s1769_s4 + $0x10] sm:$0xff]  ;;  %v1295_v42 = vld [vmem:[%s1769_s4 + $0x8] sm:$0xff] }
  0x1f   : > { %v983_v43 = vld [vmem:[%s1773_s8] sm:$0xff] }
  0x20   : > { %667 = vperm.xlu1 %1358, %v1268_v5   ;;  %659 = vperm.xlu0 %1357, %v1267_v6   ;;  %v624_v45 = vld [vmem:[%s579_s1] sm:$0xff]  ;;  %s569_s1 = sand.u32 1, %s1439_s22  }
  0x21   : > { %s1263_s19 = sshll.u32 %s569_s1, 3  ;;  %s992_s14 = scalar_lea.sflag [#allocation3], %s569_s1 }
  0x22   : > { %s571_s25 = scalar_lea.vmem [#allocation2], %s1263_s19  ;;  %s1383_s19 = scalar_lea.vmem %s1382_s18, 256 }
  0x23   : > { %s1007_s29 = sshll.u32 %s571_s25, 4  ;;  %s1720_s29 = int_to_ptr.vmem [resolvable:$true] %s1007_s29 }
  0x24   : > { %685 = vperm.xlu1 %1358, %v1269_v7   ;;  %675 = vperm.xlu0 %1357, %v671_v8   ;;  %s1377_s17 = scalar_lea.vmem %s1720_s29, 128  ;;  %p1384_p1 = scmp.lt.s32.totalorder %s1720_s29, %s1382_s18 }
  0x25   : > { %p1378_p12 = scmp.ne.s32.totalorder %s1720_s29, %s1377_s17  ;;  %p1385_p2 = scmp.lt.s32.totalorder %s1383_s19, %s1377_s17 }
  0x27   : > { %p1379_p13 = pnand %p1378_p12, %p1564_p4  ;;  %p1386_p3 = por %p1385_p2, %p1384_p1 }
  0x28   : > { %703 = vperm.xlu1 %1358, %v700_v9   ;;  %695 = vperm.xlu0 %1357, %v1270_v10  }
  0x29   : > { %p1380_p0 = pneg %p1379_p13 }
  0x2b   : > { %p1387_p5 = pnand %p1386_p3, %p1380_p0 }
  0x2c   : > { %720 = vperm.xlu1 %1358, %v1272_v11   ;;  %711 = vperm.xlu0 %1357, %v1271_v12  }
  0x30   : > { %736 = vperm.xlu1 %1358, %v1273_v13   ;;  %728 = vperm.xlu0 %1357, %v725_v14  }
  0x34   : > { %753 = vperm.xlu1 %1358, %v1275_v15   ;;  %744 = vperm.xlu0 %1357, %v1274_v16  }
  0x38   : > { %778 = vperm.xlu1 %1358, %v1278_v17   ;;  %770 = vperm.xlu0 %1357, %v1277_v18  }
  0x3c   : > { %762 = vperm.xlu1 %1358, %v1276_v19   ;;  %787 = vperm.xlu0 %1357, %v1279_v20  }
  0x40   : > { %804 = vperm.xlu1 %1358, %v800_v21   ;;  %796 = vperm.xlu0 %1357, %v1280_v22  }
  0x44   : > { %824 = vperm.xlu1 %1358, %v1282_v23   ;;  %814 = vperm.xlu0 %1357, %v1281_v24  }
  0x48   : > { %840 = vperm.xlu1 %1358, %v1283_v25   ;;  %832 = vperm.xlu0 %1357, %v829_v26  }
  0x4c   : > { %873 = vperm.xlu1 %1358, %v1286_v27   ;;  %865 = vperm.xlu0 %1357, %v1285_v28  }
  0x50   : > { %882 = vperm.xlu1 %1358, %v1287_v29   ;;  %849 = vperm.xlu0 %1357, %v1284_v30  }
  0x54   : > { %907 = vperm.xlu1 %1358, %v1290_v31   ;;  %899 = vperm.xlu0 %1357, %v1289_v32  }
  0x58   : > { %857 = vperm.xlu1 %1358, %v854_v33   ;;  %916 = vperm.xlu0 %1357, %v1291_v34  }
  0x5c   : > { %925 = vperm.xlu1 %1358, %v1292_v35   ;;  %891 = vperm.xlu0 %1357, %v1288_v36  }
  0x60   : > { %943 = vperm.xlu1 %1358, %v1293_v37   ;;  %933 = vperm.xlu0 %1357, %v929_v38  }
  0x64   : > { %961 = vperm.xlu1 %1358, %v958_v39   ;;  %953 = vperm.xlu0 %1357, %v1294_v40  }
  0x68   : > { %978 = vperm.xlu1 %1358, %v1296_v41   ;;  %969 = vperm.xlu0 %1357, %v1295_v42  }
  0x6c   : > { %986 = vperm.xlu0 %1357, %v983_v43  }
  0x97   : > { %v644_v44 = vpop.permute.xlu1 %643  ;;  %v629_v46 = vpop.permute.xlu0 %628 }
  0x98   : > { %v646_v47 = vmul.f32 %v644_v44, %v624_v45  ;;  %v631_v48 = vmul.f32 %v629_v46, %v624_v45 }
  0x9b   : > { %v652_v49 = vpop.permute.xlu1 %651  ;;  %v636_v50 = vpop.permute.xlu0 %635 }
  0x9c   : > { %v654_v51 = vadd.f32 %v652_v49, %v646_v47  ;;  %v638_v52 = vadd.f32 %v636_v50, %v631_v48 }
  0x9e   : > { %1359 = vtanh.f32 %v654_v51 }
  0x9f   : > { %1361 = vtanh.f32 %v638_v52  ;;  %v668_v53 = vpop.permute.xlu1 %667  ;;  %v660_v54 = vpop.permute.xlu0 %659 }
  0xa0   : > { %v662_v55 = vmul.f32 %v660_v54, %v624_v45 }
  0xa2   : > { %v670_v56 = vadd.f32 %v668_v53, %v662_v55 }
  0xa3   : > { %v686_v57 = vpop.permute.xlu1 %685  ;;  %v676_v58 = vpop.permute.xlu0 %675 }
  0xa4   : > { %1363 = vtanh.f32 %v670_v56 }
  0xa7   : > { %v704_v59 = vpop.permute.xlu1 %703  ;;  %v696_v60 = vpop.permute.xlu0 %695 }
  0xa8   : > { %v1360_v61 = vpop.eup %1359 }
  0xa9   : > { %v1362_v62 = vpop.eup %1361  ;;  %v688_v63 = vmul.f32 %v1360_v61, %v686_v57 }
  0xaa   : > { %v678_v0 = vmul.f32 %v1362_v62, %v676_v58 }
  0xab   : > { %v689_v1 = vadd.f32 %v688_v63, %v654_v51  ;;  %v721_v2 = vpop.permute.xlu1 %720  ;;  %v712_v3 = vpop.permute.xlu0 %711 }
  0xac   : > { %v679_v4 = vadd.f32 %v678_v0, %v638_v52 }
  0xad   : > { %v714_v8 = vmul.f32 %v712_v3, %v689_v1 }
  0xae   : > { %v1364_v5 = vpop.eup %1363  ;;  %v706_v6 = vmul.f32 %v704_v59, %v679_v4 }
  0xaf   : > { %v698_v7 = vmul.f32 %v1364_v5, %v696_v60  ;;  %v737_v9 = vpop.permute.xlu1 %736  ;;  %v729_v10 = vpop.permute.xlu0 %728 }
  0xb0   : > { %v715_v13 = vadd.f32 %v714_v8, %v706_v6  ;;  %v739_v16 = vmul.f32 %v737_v9, %v679_v4 }
  0xb1   : > { %v699_v11 = vadd.f32 %v698_v7, %v670_v56 }
  0xb3   : > { %v723_v12 = vmul.f32 %v721_v2, %v699_v11  ;;  %v754_v14 = vpop.permute.xlu1 %753  ;;  %v745_v15 = vpop.permute.xlu0 %744 }
  0xb4   : > { %v747_v17 = vmul.f32 %v745_v15, %v689_v1  ;;  %v756_v22 = vmul.f32 %v754_v14, %v699_v11 }
  0xb5   : > { %v724_v18 = vadd.f32 %v723_v12, %v715_v13 }
  0xb6   : > { %v748_v19 = vadd.f32 %v747_v17, %v739_v16 }
  0xb7   : > { %v779_v20 = vpop.permute.xlu1 %778  ;;  %v771_v21 = vpop.permute.xlu0 %770  ;;  %v731_v25 = vadd.f32 %v729_v10, %v724_v18 }
  0xb8   : > { %v781_v23 = vmul.f32 %v779_v20, %v689_v1  ;;  %v773_v24 = vmul.f32 %v771_v21, %v679_v4  ;;  %v757_v26 = vadd.f32 %v756_v22, %v748_v19 }
  0xb9   : > { %1365 = vtanh.f32 %v731_v25 }
  0xba   : > { %v782_v29 = vadd.f32 %v781_v23, %v773_v24 }
  0xbb   : > { %v763_v27 = vpop.permute.xlu1 %762  ;;  %v788_v28 = vpop.permute.xlu0 %787 }
  0xbc   : > { %v765_v30 = vadd.f32 %v763_v27, %v757_v26  ;;  %v790_v31 = vmul.f32 %v788_v28, %v699_v11 }
  0xbe   : > { %1367 = vtanh.f32 %v765_v30  ;;  %v791_v32 = vadd.f32 %v790_v31, %v782_v29 }
  0xbf   : > { %v805_v33 = vpop.permute.xlu1 %804  ;;  %v797_v34 = vpop.permute.xlu0 %796 }
  0xc0   : > { %v799_v35 = vadd.f32 %v797_v34, %v791_v32 }
  0xc2   : > { %1369 = vtanh.f32 %v799_v35 }
  0xc3   : > { %v825_v36 = vpop.permute.xlu1 %824  ;;  %v815_v37 = vpop.permute.xlu0 %814 }
  0xc4   : > { %v1366_v38 = vpop.eup %1365 }
  0xc5   : > { %v807_v43 = vmul.f32 %v1366_v38, %v805_v33 }
  0xc7   : > { %v841_v39 = vpop.permute.xlu1 %840  ;;  %v833_v40 = vpop.permute.xlu0 %832  ;;  %v808_v49 = vadd.f32 %v807_v43, %v731_v25 }
  0xc8   : > { %v1368_v41 = vpop.eup %1367 }
  0xc9   : > { %v817_v42 = vmul.f32 %v1368_v41, %v815_v37  ;;  %v835_v54 = vmul.f32 %v833_v40, %v808_v49 }
  0xcb   : > { %v874_v44 = vpop.permute.xlu1 %873  ;;  %v866_v45 = vpop.permute.xlu0 %865  ;;  %v818_v47 = vadd.f32 %v817_v42, %v765_v30 }
  0xcc   : > { %v1370_v46 = vpop.eup %1369  ;;  %v868_v56 = vmul.f32 %v866_v45, %v808_v49 }
  0xcd   : > { %v827_v48 = vmul.f32 %v1370_v46, %v825_v36  ;;  %v843_v53 = vmul.f32 %v841_v39, %v818_v47  ;;  %v876_v60 = vmul.f32 %v874_v44, %v818_v47 }
  0xcf   : > { %v828_v50 = vadd.f32 %v827_v48, %v799_v35  ;;  %v883_v51 = vpop.permute.xlu1 %882  ;;  %v850_v52 = vpop.permute.xlu0 %849  ;;  %v844_v59 = vadd.f32 %v843_v53, %v835_v54  ;;  %v877_v3 = vadd.f32 %v876_v60, %v868_v56 }
  0xd1   : > { %v852_v55 = vmul.f32 %v850_v52, %v828_v50  ;;  %v885_v63 = vmul.f32 %v883_v51, %v828_v50 }
  0xd3   : > { %v908_v57 = vpop.permute.xlu1 %907  ;;  %v900_v58 = vpop.permute.xlu0 %899  ;;  %v853_v0 = vadd.f32 %v852_v55, %v844_v59  ;;  %v886_v8 = vadd.f32 %v885_v63, %v877_v3 }
  0xd4   : > { %v910_v61 = vmul.f32 %v908_v57, %v818_v47  ;;  %v902_v62 = vmul.f32 %v900_v58, %v808_v49 }
  0xd6   : > { %v911_v4 = vadd.f32 %v910_v61, %v902_v62 }
  0xd7   : > { %v858_v1 = vpop.permute.xlu1 %857  ;;  %v917_v2 = vpop.permute.xlu0 %916 }
  0xd8   : > { %v860_v5 = vadd.f32 %v858_v1, %v853_v0  ;;  %v919_v6 = vmul.f32 %v917_v2, %v828_v50 }
  0xda   : > { %1371 = vtanh.f32 %v860_v5  ;;  %v920_v7 = vadd.f32 %v919_v6, %v911_v4 }
  0xdb   : > { %v926_v9 = vpop.permute.xlu1 %925  ;;  %v892_v10 = vpop.permute.xlu0 %891 }
  0xdc   : > { %v928_v11 = vadd.f32 %v926_v9, %v920_v7  ;;  %v894_v12 = vadd.f32 %v892_v10, %v886_v8 }
  0xde   : > { %1373 = vtanh.f32 %v928_v11 }
  0xdf   : > { %1375 = vtanh.f32 %v894_v12  ;;  %v934_v13 = vpop.permute.xlu0 %933  ;;  %v944_v14 = vpop.permute.xlu1 %943 }
  0xe3   : > { %v954_v17 = vpop.permute.xlu0 %953  ;;  %v962_v20 = vpop.permute.xlu1 %961 }
  0xe4   : > { %v1372_v15 = vpop.eup %1371 }
  0xe5   : > { %v936_v16 = vmul.f32 %v1372_v15, %v934_v13 }
  0xe7   : > { %v937_v23 = vadd.f32 %v936_v16, %v860_v5  ;;  %v970_v26 = vpop.permute.xlu0 %969  ;;  %v979_v29 = vpop.permute.xlu1 %978 }
  0xe8   : > { %v1374_v18 = vpop.eup %1373 }
  0xe9   : > { %v1376_v19 = vpop.eup %1375  ;;  %v956_v21 = vmul.f32 %v1374_v18, %v954_v17  ;;  %v964_v27 = vmul.f32 %v962_v20, %v937_v23 }
  0xea   : > { %v946_v22 = vmul.f32 %v1376_v19, %v944_v14 }
  0xeb   : > { %v957_v24 = vadd.f32 %v956_v21, %v928_v11  ;;  %v987_v33 = vpop.permute.xlu0 %986 }
  0xec   : > { %v947_v25 = vadd.f32 %v946_v22, %v894_v12 }
  0xed   : > { %v981_v30 = vmul.f32 %v979_v29, %v957_v24 }
  0xee   : > { %v972_v28 = vmul.f32 %v970_v26, %v947_v25 }
  0xf0   : > { %v973_v31 = vadd.f32 %v972_v28, %v964_v27 }
  0xf2   : > { %v982_v32 = vadd.f32 %v981_v30, %v973_v31 }
  0xf4   : > { %v989_v34 = vadd.f32 %v987_v33, %v982_v32 }
  0xf6   : > { %990 = vst [vmem:[%s571_s25] sm:$0xff] %v989_v34 }
  0xf7   : > { %1390 = shalt.err (!%p1387_p5)
}
  0xf8   : > { %s1391_s1 = scalar_lea.hbm %s1718_s30, 128  ;;  %s1395_s27 = scalar_lea.hbm %s1777_s12, 384 }
  0xf9   : > { %p1392_p6 = scmp.ne.s32.totalorder %s1718_s30, %s1391_s1  ;;  %p1396_p10 = scmp.lt.u32.totalorder %s1718_s30, %s1777_s12 }
  0xfa   : > { %p1397_p11 = scmp.lt.u32.totalorder %s1395_s27, %s1391_s1  ;;  %p1399_p13 = scmp.lt.u32.totalorder %s1391_s1, %s1718_s30 }
  0xfb   : > { %p1393_p7 = pnand %p1392_p6, %p1564_p4 }
  0xfc   : > { %p1398_p12 = por %p1397_p11, %p1396_p10 }
  0xfd   : > { %p1394_p9 = pneg %p1393_p7 }
  0xfe   : > { %p1400_p0 = por %p1399_p13, %p1398_p12 }
 0x100   : > { %p1401_p1 = pnand %p1400_p0, %p1394_p9 }
 0x102   : > { %1404 = shalt.err (!%p1401_p1)
}
 0x103   : > { %1301 = dma.vmem_to_hbm [thread:$0]  (%p1564_p4), %s1720_s29, 128, %s1718_s30, %s992_s14  }
 0x104 PF: > { %p1307_p2 = scmp.ge.s32.totalorder %s1455_s26, 2  ;;  %s1019_s17 = sand.u32 1, %s1435_s21  }
 0x105   : > { %s1020_s18 = scalar_lea.sflag [#allocation3], %s1019_s17 }
 0x106   : > { %p1304_p3 = pnand %p1307_p2, %p1571_p8 }
 0x108   : > { %1430 = dma.done.wait (!%p1304_p3), %s1020_s18, 128  }
 0x109   : > { %1432 = vsyncadd (!%p1304_p3), %s1020_s18, 4294967168  ;;  %s25_s26 = sadd.s32 1, %s1455_s26   ;;  %s1786_s24 = sld [smem:[#allocation5_spill]] }
 0x10a   : > { %p22_p5 = scmp.ge.s32.totalorder %s25_s26, 5   ;;  %s1787_s25 = sld [smem:[#allocation6_spill]] }
 0x10b   : > { %s1788_s21 = smov %s1439_s22  ;;  %s1789_s22 = smov %s1443_s23 }
 0x10c   : > { %s1790_s23 = smov %s1577_s16  ;;  %24 = sbr.rel (!%p22_p5) target bundleno = 6 (0x6), region = 168 }
 0x113   :  { %1025 = vsyncpa [#allocation3], 1 }
 0x114   :  { %1027 = vsyncpa [#allocation3 + $0x1], 1 }

</bundles_post_ra>
